<compile_context>
chip_gen: v6e
topology: v6e:2x2x1
jax: 0.10.0
libtpu: 0.0.40
codegen_flags: <defaults>
</compile_context>

<pallas_src>
import functools

import jax
import jax.numpy as jnp
from jax.experimental import pallas as pl
from jax.experimental.pallas import tpu as pltpu


# ----------------------------------------------------------------------------
# Fused kernel: gated conv (one matmul per sample) + ReLU*sigmoid gate + BatchNorm2d.
# Everything (patch, weights, output) lives in VMEM for the whole (tiny) problem,
# so a single un-gridded pallas_call does all N samples and the batch statistics.
#
# TODO(synk): for large images / large N this must become a gridded two-pass
#             formulation (per-block stats then normalize), with row-tiled input
#             blocks sized for v7x's 64 MiB VMEM and a "parallel" grid axis so
#             both v7x TensorCores are used.
# ----------------------------------------------------------------------------
def _fused_gated_conv_bn_kernel(patch_ref, w_ref, b_ref, gamma_ref, beta_ref,
                                out_ref, *, n_batch, cout, eps):
    # patch_ref: (N, K, HW)  bf16  im2col'd input, transposed (spatial in lanes), K=kh*kw*Cin
    # w_ref:     (2*Cout, K) bf16  rows [0,Cout)=feature conv, rows [Cout,2*Cout)=gate conv
    # b_ref:     (2*Cout, 1) f32   fused biases (broadcast over lanes)
    # gamma_ref: (Cout, 1)   f32   BN weight
    # beta_ref:  (Cout, 1)   f32   BN bias
    # out_ref:   (N, Cout, HW) f32 i.e. NCHW with (H, W) flattened into the lane dim
    hw = out_ref.shape[-1]

    # ---- gated convolution: one MXU matmul per sample (static unroll, tiny N) ----
    gated = []
    for n in range(n_batch):
        z = jnp.dot(w_ref[...], patch_ref[n],
                    preferred_element_type=jnp.float32)          # (2*Cout, HW), f32 acc
        z = z + b_ref[...]                                       # broadcast bias over lanes
        feat = z[:cout, :]
        gate = z[cout:, :]
        gated.append(jnp.maximum(feat, 0.0) * jax.nn.sigmoid(gate))   # ReLU(f(I))*sigmoid(g(I))

    # ---- BatchNorm2d (training mode): biased batch stats over (N, H, W) per channel ----
    count = float(n_batch * hw)
    total = gated[0]
    for n in range(1, n_batch):
        total = total + gated[n]
    mean = jnp.sum(total, axis=1, keepdims=True) / count          # (Cout, 1), lane reduce (XLU)
    var = jnp.zeros_like(mean)
    for n in range(n_batch):
        d = gated[n] - mean
        var = var + jnp.sum(d * d, axis=1, keepdims=True)
    var = var / count
    scale = gamma_ref[...] * jax.lax.rsqrt(var + eps)             # (Cout, 1)
    shift = beta_ref[...] - mean * scale

    # ---- normalize + store: full-width lane-dense stores, NCHW layout ----
    for n in range(n_batch):
        out_ref[n] = gated[n] * scale + shift


# ----------------------------------------------------------------------------
# Wrapper: layout plumbing only (pad, im2col, fused/transposed weight reshape).
# ----------------------------------------------------------------------------
def gated_conv2d_with_activation(x_nchw, w_feat, b_feat, w_gate, b_gate,
                                 gamma, beta, *, padding=1, eps=1e-5):
    # TODO(synk): only stride=1, dilation=1, groups=1 are implemented here
    #             (the defaults used for this module instance).
    N, Cin, Hin, Win = x_nchw.shape
    Cout, _, kh, kw = w_feat.shape
    H = Hin + 2 * padding - kh + 1
    W = Win + 2 * padding - kw + 1
    HW = H * W
    K = kh * kw * Cin

    # Pad + im2col in the transposed (K, H*W) orientation; bf16 for the MXU inputs.
    xpad = jnp.pad(x_nchw.astype(jnp.float32),
                   ((0, 0), (0, 0), (padding, padding), (padding, padding)))
    xpad = xpad.astype(jnp.bfloat16)
    cols = [xpad[:, :, dy:dy + H, dx:dx + W].reshape(N, Cin, HW)
            for dy in range(kh) for dx in range(kw)]
    patch_t = jnp.concatenate(cols, axis=1)                       # (N, K, HW)

    # Fused, pre-flattened weights: (2*Cout, K) with K ordered (dy, dx, cin) to match patch_t.
    def _wt(w):  # (Cout, Cin, kh, kw) -> (Cout, K)
        return jnp.transpose(w, (0, 2, 3, 1)).reshape(Cout, K)
    w_t = jnp.concatenate([_wt(w_feat), _wt(w_gate)], axis=0).astype(jnp.bfloat16)  # (2*Cout, K)
    b_t = jnp.concatenate([b_feat, b_gate], axis=0).reshape(2 * Cout, 1).astype(jnp.float32)

    out_flat = pl.pallas_call(
        functools.partial(_fused_gated_conv_bn_kernel,
                          n_batch=N, cout=Cout, eps=eps),
        out_shape=jax.ShapeDtypeStruct((N, Cout, HW), jnp.float32),
        compiler_params=pltpu.CompilerParams(vmem_limit_bytes=32 * 1024 * 1024),
    )(patch_t, w_t, b_t,
      gamma.reshape(Cout, 1).astype(jnp.float32),
      beta.reshape(Cout, 1).astype(jnp.float32))

    # Free (contiguous) reshape back to NCHW — no transpose needed.
    return out_flat.reshape(N, Cout, H, W)


# ----------------------------------------------------------------------------
# Pure-JAX reference (mirrors the PyTorch forward) for correctness checks.
# ----------------------------------------------------------------------------
def _reference(x_nchw, w_feat, b_feat, w_gate, b_gate, gamma, beta,
               *, padding=1, eps=1e-5):
    dn = ("NCHW", "OIHW", "NCHW")
    conv = lambda w, b: jax.lax.conv_general_dilated(
        x_nchw, w, window_strides=(1, 1),
        padding=[(padding, padding), (padding, padding)],
        dimension_numbers=dn,
        precision=jax.lax.Precision.HIGHEST) + b[None, :, None, None]
    f = conv(w_feat, b_feat)
    g = conv(w_gate, b_gate)
    y = jnp.maximum(f, 0.0) * jax.nn.sigmoid(g)
    mean = jnp.mean(y, axis=(0, 2, 3), keepdims=True)
    var = jnp.mean(jnp.square(y - mean), axis=(0, 2, 3), keepdims=True)   # biased var
    return ((y - mean) * jax.lax.rsqrt(var + eps)
            * gamma[None, :, None, None] + beta[None, :, None, None])


if __name__ == "__main__":
    key = jax.random.PRNGKey(0)
    N, Cin, Hin, Win = 2, 4, 16, 16
    Cout, kh, kw = 8, 3, 3

    k_x, k_wf, k_bf, k_wg, k_bg = jax.random.split(key, 5)
    x = jax.random.normal(k_x, (N, Cin, Hin, Win), jnp.float32)

    # Deterministic init: kaiming_normal_ on conv weights (fan_in, gain=sqrt(2)),
    # Conv2d-default uniform(-1/sqrt(fan_in), 1/sqrt(fan_in)) on biases.
    fan_in = Cin * kh * kw
    std = (2.0 / fan_in) ** 0.5
    bound = 1.0 / (fan_in ** 0.5)
    w_feat = std * jax.random.normal(k_wf, (Cout, Cin, kh, kw), jnp.float32)
    w_gate = std * jax.random.normal(k_wg, (Cout, Cin, kh, kw), jnp.float32)
    b_feat = jax.random.uniform(k_bf, (Cout,), jnp.float32, -bound, bound)
    b_gate = jax.random.uniform(k_bg, (Cout,), jnp.float32, -bound, bound)
    gamma = jnp.ones((Cout,), jnp.float32)     # BatchNorm2d init
    beta = jnp.zeros((Cout,), jnp.float32)

    out = gated_conv2d_with_activation(x, w_feat, b_feat, w_gate, b_gate,
                                       gamma, beta, padding=1)
    out = jax.block_until_ready(out)
    assert out.shape == (N, Cout, Hin, Win), out.shape

    # Tight check (catches layout/indexing bugs): compare against a reference fed the
    # same bf16-rounded matmul inputs, with f32 math everywhere else. Only accumulation
    # order and transcendental-approximation differences remain.
    rb = lambda a: a.astype(jnp.bfloat16).astype(jnp.float32)
    ref_tight = _reference(rb(x), rb(w_feat), b_feat, rb(w_gate), b_gate,
                           gamma, beta, padding=1)
    err_tight = float(jnp.max(jnp.abs(out - ref_tight)))
    assert err_tight < 5e-3, err_tight

    # Semantic check against the pure-f32 module math; tolerance covers the bf16
    # rounding of the MXU matmul inputs.
    ref_f32 = _reference(x, w_feat, b_feat, w_gate, b_gate, gamma, beta, padding=1)
    err_f32 = float(jnp.max(jnp.abs(out - ref_f32)))
    assert err_f32 < 5e-2, err_f32

    print("KERNEL_OK")
</pallas_src>

<mosaic_0001>
module attributes {stable_mosaic.version = 11 : i64} {
  func.func @_fused_gated_conv_bn_kernel(%arg0: memref<2x36x256xbf16, #tpu.memory_space<vmem>>, %arg1: memref<16x36xbf16, #tpu.memory_space<vmem>>, %arg2: memref<16x1xf32, #tpu.memory_space<vmem>>, %arg3: memref<8x1xf32, #tpu.memory_space<vmem>>, %arg4: memref<8x1xf32, #tpu.memory_space<vmem>>, %arg5: memref<2x8x256xf32, #tpu.memory_space<vmem>>) attributes {dimension_semantics = [], scalar_prefetch = 0 : i64, scratch_operands = 0 : i64, tpu.core_type = #tpu.core_type<tc>} {
    %c0 = arith.constant 0 : index
    %c0_0 = arith.constant 0 : index
    %0 = vector.load %arg1[%c0, %c0_0] : memref<16x36xbf16, #tpu.memory_space<vmem>>, vector<16x36xbf16>
    %c0_1 = arith.constant 0 : index
    %c0_2 = arith.constant 0 : index
    %c0_3 = arith.constant 0 : index
    %1 = vector.load %arg0[%c0_1, %c0_2, %c0_3] : memref<2x36x256xbf16, #tpu.memory_space<vmem>>, vector<1x36x256xbf16>
    %2 = vector.shape_cast %1 : vector<1x36x256xbf16> to vector<36x256xbf16>
    %cst = arith.constant dense<0.000000e+00> : vector<16x256xf32>
    %3 = tpu.matmul %0, %2, %cst {dimension_numbers = #tpu.dot_dimension_numbers<[1], [0], [0], [1], [0, 0, 1, 1], [], []>} : vector<16x36xbf16>, vector<36x256xbf16>, vector<16x256xf32> -> vector<16x256xf32>
    %c0_4 = arith.constant 0 : index
    %c0_5 = arith.constant 0 : index
    %4 = vector.load %arg2[%c0_4, %c0_5] : memref<16x1xf32, #tpu.memory_space<vmem>>, vector<16x1xf32>
    %5 = vector.broadcast %4 : vector<16x1xf32> to vector<16x256xf32>
    %6 = arith.addf %3, %5 : vector<16x256xf32>
    %7 = vector.extract_strided_slice %6 {offsets = [0, 0], sizes = [8, 256], strides = [1, 1]} : vector<16x256xf32> to vector<8x256xf32>
    %8 = vector.extract_strided_slice %6 {offsets = [8, 0], sizes = [8, 256], strides = [1, 1]} : vector<16x256xf32> to vector<8x256xf32>
    %cst_6 = arith.constant 0.000000e+00 : f32
    %9 = vector.broadcast %cst_6 : f32 to vector<8x256xf32>
    %10 = arith.maximumf %7, %9 : vector<8x256xf32>
    %11 = arith.negf %8 : vector<8x256xf32>
    %12 = math.exp %11 : vector<8x256xf32>
    %cst_7 = arith.constant 1.000000e+00 : f32
    %13 = vector.broadcast %cst_7 : f32 to vector<8x256xf32>
    %14 = arith.addf %13, %12 : vector<8x256xf32>
    %15 = arith.divf %13, %14 : vector<8x256xf32>
    %16 = arith.mulf %10, %15 : vector<8x256xf32>
    %c0_8 = arith.constant 0 : index
    %c0_9 = arith.constant 0 : index
    %17 = vector.load %arg1[%c0_8, %c0_9] : memref<16x36xbf16, #tpu.memory_space<vmem>>, vector<16x36xbf16>
    %c1 = arith.constant 1 : index
    %c0_10 = arith.constant 0 : index
    %c0_11 = arith.constant 0 : index
    %18 = vector.load %arg0[%c1, %c0_10, %c0_11] : memref<2x36x256xbf16, #tpu.memory_space<vmem>>, vector<1x36x256xbf16>
    %19 = vector.shape_cast %18 : vector<1x36x256xbf16> to vector<36x256xbf16>
    %cst_12 = arith.constant dense<0.000000e+00> : vector<16x256xf32>
    %20 = tpu.matmul %17, %19, %cst_12 {dimension_numbers = #tpu.dot_dimension_numbers<[1], [0], [0], [1], [0, 0, 1, 1], [], []>} : vector<16x36xbf16>, vector<36x256xbf16>, vector<16x256xf32> -> vector<16x256xf32>
    %c0_13 = arith.constant 0 : index
    %c0_14 = arith.constant 0 : index
    %21 = vector.load %arg2[%c0_13, %c0_14] : memref<16x1xf32, #tpu.memory_space<vmem>>, vector<16x1xf32>
    %22 = vector.broadcast %21 : vector<16x1xf32> to vector<16x256xf32>
    %23 = arith.addf %20, %22 : vector<16x256xf32>
    %24 = vector.extract_strided_slice %23 {offsets = [0, 0], sizes = [8, 256], strides = [1, 1]} : vector<16x256xf32> to vector<8x256xf32>
    %25 = vector.extract_strided_slice %23 {offsets = [8, 0], sizes = [8, 256], strides = [1, 1]} : vector<16x256xf32> to vector<8x256xf32>
    %cst_15 = arith.constant 0.000000e+00 : f32
    %26 = vector.broadcast %cst_15 : f32 to vector<8x256xf32>
    %27 = arith.maximumf %24, %26 : vector<8x256xf32>
    %28 = arith.negf %25 : vector<8x256xf32>
    %29 = math.exp %28 : vector<8x256xf32>
    %cst_16 = arith.constant 1.000000e+00 : f32
    %30 = vector.broadcast %cst_16 : f32 to vector<8x256xf32>
    %31 = arith.addf %30, %29 : vector<8x256xf32>
    %32 = arith.divf %30, %31 : vector<8x256xf32>
    %33 = arith.mulf %27, %32 : vector<8x256xf32>
    %34 = arith.addf %16, %33 : vector<8x256xf32>
    %cst_17 = arith.constant dense<0.000000e+00> : vector<8xf32>
    %35 = vector.multi_reduction <add>, %34, %cst_17 [1] : vector<8x256xf32> to vector<8xf32>
    %36 = vector.shape_cast %35 : vector<8xf32> to vector<8x1xf32>
    %cst_18 = arith.constant 5.120000e+02 : f32
    %37 = vector.broadcast %cst_18 : f32 to vector<8x1xf32>
    %38 = arith.divf %36, %37 : vector<8x1xf32>
    %cst_19 = arith.constant 0.000000e+00 : f32
    %39 = vector.broadcast %cst_19 : f32 to vector<8x1xf32>
    %40 = vector.broadcast %38 : vector<8x1xf32> to vector<8x256xf32>
    %41 = arith.subf %16, %40 : vector<8x256xf32>
    %42 = arith.mulf %41, %41 : vector<8x256xf32>
    %cst_20 = arith.constant dense<0.000000e+00> : vector<8xf32>
    %43 = vector.multi_reduction <add>, %42, %cst_20 [1] : vector<8x256xf32> to vector<8xf32>
    %44 = vector.shape_cast %43 : vector<8xf32> to vector<8x1xf32>
    %45 = arith.addf %39, %44 : vector<8x1xf32>
    %46 = vector.broadcast %38 : vector<8x1xf32> to vector<8x256xf32>
    %47 = arith.subf %33, %46 : vector<8x256xf32>
    %48 = arith.mulf %47, %47 : vector<8x256xf32>
    %cst_21 = arith.constant dense<0.000000e+00> : vector<8xf32>
    %49 = vector.multi_reduction <add>, %48, %cst_21 [1] : vector<8x256xf32> to vector<8xf32>
    %50 = vector.shape_cast %49 : vector<8xf32> to vector<8x1xf32>
    %51 = arith.addf %45, %50 : vector<8x1xf32>
    %cst_22 = arith.constant 5.120000e+02 : f32
    %52 = vector.broadcast %cst_22 : f32 to vector<8x1xf32>
    %53 = arith.divf %51, %52 : vector<8x1xf32>
    %c0_23 = arith.constant 0 : index
    %c0_24 = arith.constant 0 : index
    %54 = vector.load %arg3[%c0_23, %c0_24] : memref<8x1xf32, #tpu.memory_space<vmem>>, vector<8x1xf32>
    %cst_25 = arith.constant 9.99999974E-6 : f32
    %55 = vector.broadcast %cst_25 : f32 to vector<8x1xf32>
    %56 = arith.addf %53, %55 : vector<8x1xf32>
    %57 = math.rsqrt %56 : vector<8x1xf32>
    %58 = arith.mulf %54, %57 : vector<8x1xf32>
    %c0_26 = arith.constant 0 : index
    %c0_27 = arith.constant 0 : index
    %59 = vector.load %arg4[%c0_26, %c0_27] : memref<8x1xf32, #tpu.memory_space<vmem>>, vector<8x1xf32>
    %60 = arith.mulf %38, %58 : vector<8x1xf32>
    %61 = arith.subf %59, %60 : vector<8x1xf32>
    %62 = vector.broadcast %58 : vector<8x1xf32> to vector<8x256xf32>
    %63 = arith.mulf %16, %62 : vector<8x256xf32>
    %64 = vector.broadcast %61 : vector<8x1xf32> to vector<8x256xf32>
    %65 = arith.addf %63, %64 : vector<8x256xf32>
    %c0_28 = arith.constant 0 : index
    %c0_29 = arith.constant 0 : index
    %c0_30 = arith.constant 0 : index
    %66 = vector.load %arg5[%c0_28, %c0_29, %c0_30] : memref<2x8x256xf32, #tpu.memory_space<vmem>>, vector<1x8x256xf32>
    %67 = vector.shape_cast %66 : vector<1x8x256xf32> to vector<8x256xf32>
    %68 = vector.shape_cast %65 : vector<8x256xf32> to vector<1x8x256xf32>
    tpu.vector_store %arg5[%c0_28, %c0_29, %c0_30], %68 {strides = array<i32>} : memref<2x8x256xf32, #tpu.memory_space<vmem>>, vector<1x8x256xf32>,
    %69 = vector.broadcast %58 : vector<8x1xf32> to vector<8x256xf32>
    %70 = arith.mulf %33, %69 : vector<8x256xf32>
    %71 = vector.broadcast %61 : vector<8x1xf32> to vector<8x256xf32>
    %72 = arith.addf %70, %71 : vector<8x256xf32>
    %c1_31 = arith.constant 1 : index
    %c0_32 = arith.constant 0 : index
    %c0_33 = arith.constant 0 : index
    %73 = vector.load %arg5[%c1_31, %c0_32, %c0_33] : memref<2x8x256xf32, #tpu.memory_space<vmem>>, vector<1x8x256xf32>
    %74 = vector.shape_cast %73 : vector<1x8x256xf32> to vector<8x256xf32>
    %75 = vector.shape_cast %72 : vector<8x256xf32> to vector<1x8x256xf32>
    tpu.vector_store %arg5[%c1_31, %c0_32, %c0_33], %75 {strides = array<i32>} : memref<2x8x256xf32, #tpu.memory_space<vmem>>, vector<1x8x256xf32>,
    return
  }
}

</mosaic_0001>

<bundles_post_ra>
// kernel: tpu_custom_call.1
= control target key start
LH: loop header
LB: loop body
LE: loop exit
PB: predicated region body
PF: predicated region fallthrough
CT: control target
= control target key end

     0   :  { %vm75_vm0 = vcmask 1041408   ;;  %v396_v14 = vmov 0   ;;  %s478_s0 = inlined_call_operand.vmem [shape: bf16[2,36,256], index: 0, kind: input, shape index: {}]   ;;  %s479_s1 = inlined_call_operand.vmem [shape: bf16[16,36], index: 1, kind: input, shape index: {}]   ;;  %s480_s2 = inlined_call_operand.vmem [shape: f32[16,1], index: 2, kind: input, shape index: {}]   ;;  %s481_s3 = inlined_call_operand.vmem [shape: f32[8,1], index: 3, kind: input, shape index: {}]   ;;  %s482_s4 = inlined_call_operand.vmem [shape: f32[8,1], index: 4, kind: input, shape index: {}]   ;;  %s483_s5 = inlined_call_operand.hbm [shape: f32[2,8,256], index: 5, kind: output, shape index: {}]  }
   0x1   :  { %v28_v0 = vld [vmem:[%s478_s0 + $0x20] sm:$0x33]  ;;  %v322_v1 = vld [vmem:[%s478_s0 + $0x48] sm:$0x33]  ;;  %v343_v6 = vld [vmem:[%s478_s0 + $0x14] ss:$8 sps:$4 sm:$0xff]   ;;  %114 = vmatprep.mubr.bf16.mxu0 %v396_v14  ;;  %210 = vmatprep.mubr.bf16.mxu1 %v396_v14 }
   0x2   :  { %v313_v2 = vcombine.high %v28_v0, %v28_v0  ;;  %v328_v3 = vcombine.high %v322_v1, %v322_v1  ;;  %v312_v4 = vcombine.low %v28_v0, %v28_v0  ;;  %v327_v5 = vcombine.low %v322_v1, %v322_v1  ;;  %v345_v7 = vld [vmem:[%s478_s0 + $0x3c] ss:$8 sps:$4 sm:$0xff]   ;;  %v347_v8 = vld [vmem:[%s478_s0 + $0x10] ss:$8 sps:$4 sm:$0xff]   ;;  %v351_v13 = vld [vmem:[%s478_s0 + $0x2c] ss:$8 sps:$4 sm:$0xff]   ;;  %337 = vset.pattern.permute.xlu0 %v396_v14 }
   0x3   :  { %v348_v11 = vld [vmem:[%s478_s0 + $0x38] ss:$8 sps:$4 sm:$0xff]   ;;  %v349_v12 = vld [vmem:[%s478_s0 + $0x4] ss:$8 sps:$4 sm:$0xff]   ;;  %338 = vset.pattern.permute.xlu1 %v396_v14 }
   0x4   :  { %314 = vmatprep.subr.msk.bf16.mxu0 %vm75_vm0, %v313_v2  ;;  %329 = vmatprep.subr.msk.bf16.mxu1 %vm75_vm0, %v328_v3  ;;  %v77_v9 = vsel %vm75_vm0, %v312_v4, 0  ;;  %v173_v10 = vsel %vm75_vm0, %v327_v5, 0  ;;  %v30_v15 = vld [vmem:[%s480_s2 + $0x8] sm:$0xff] }
   0x5   :  { %93 = vmatpush1.bf16.msra.mxu0 %v77_v9  ;;  %189 = vmatpush1.bf16.msra.mxu1 %v173_v10 }
   0x6   :  { %94 = vmatprep.subr.bf16.mxu0 %v343_v6  ;;  %190 = vmatprep.subr.bf16.mxu1 %v345_v7 }
   0x7   :  { %10 = vsyncpa [#allocation3], 0  ;;  %v353_v16 = vld [vmem:[%s478_s0] ss:$8 sps:$4 sm:$0xff]   ;;  %38 = vperm.xlu0 %337, %v30_v15   ;;  %vm71_vm1 = vcmask 293888   ;;  %s397_s20 = smov [#allocation2]  }
   0x8   :  { %v354_v17 = vld [vmem:[%s478_s0 + $0x28] ss:$8 sps:$4 sm:$0xff]   ;;  %v355_v18 = vld [vmem:[%s479_s1] sm:$0xff]   ;;  %s296_s21 = sshll.u32 %s397_s20, 4  ;;  %s297_s21 = int_to_ptr.vmem [resolvable:$true] %s296_s21 }
   0x9   :  { %95 = vmatpush1.bf16.msra.mxu0 %v347_v8  ;;  %191 = vmatpush1.bf16.msra.mxu1 %v348_v11  ;;  %v29_v19 = vld [vmem:[%s480_s2] sm:$0xff]  ;;  %p379_p1 = scmp.lt.s32.totalorder %s297_s21, %s297_s21 }
   0xa   :  { %96 = vmatprep.subr.bf16.mxu0 %v349_v12  ;;  %192 = vmatprep.subr.bf16.mxu1 %v351_v13 }
   0xb   :  { %33 = vperm.xlu0 %337, %v29_v19  }
   0xd   :  { %97 = vmatpush1.bf16.msra.mxu0 %v353_v16  ;;  %193 = vmatpush1.bf16.msra.mxu1 %v354_v17 }
  0x10   :  { %315 = vmatmul.mubr.msk.bf16.vlgmr.msra.gmra.mxu0 %vm71_vm1, %v355_v18  ;;  %330 = vmatmul.mubr.msk.bf16.vlgmr.msra.gmra.mxu1 %vm71_vm1, %v355_v18  ;;  %v261_v18 = vld [vmem:[%s481_s3] sm:$0xff]  ;;  %s374_s3 = scalar_lea.vmem %s297_s21, 512 }
  0x11   :  { %p375_p0 = scmp.ne.s32.totalorder %s297_s21, %s374_s3  ;;  %p380_p2 = scmp.lt.s32.totalorder %s374_s3, %s374_s3 }
  0x13   :  { %p381_p3 = por %p380_p2, %p379_p1 }
  0x15   :  { %p382_p4 = pnand %p381_p3, %p375_p0 }
  0x82   :  { %v39_v24 = vpop.permute.xlu0 %38 }
  0x86   :  { %v34_v45 = vpop.permute.xlu0 %33 }
  0xd0   :  { %v116_v20 = vpop.f32.mrf.mxu0  ;;  %v212_v21 = vpop.f32.mrf.mxu1 }
  0xd1   :  { %v117_v46 = vadd.f32 %v116_v20, %v34_v45  ;;  %v213_v47 = vadd.f32 %v212_v21, %v34_v45  ;;  %v265_v21 = vld [vmem:[%s482_s4] sm:$0xff] }
  0xd2   :  { %v118_v22 = vpop.f32.mrf.mxu0  ;;  %v214_v23 = vpop.f32.mrf.mxu1 }
  0xd3   :  { %v119_v48 = vadd.f32 %v118_v22, %v34_v45  ;;  %v215_v49 = vadd.f32 %v214_v23, %v34_v45  ;;  %v125_v51 = vmax.f32 %v117_v46, 0.0  ;;  %v221_v52 = vmax.f32 %v213_v47, 0.0 }
  0xd4   :  { %v120_v25 = vpop.f32.mrf.mxu0  ;;  %v216_v26 = vpop.f32.mrf.mxu1 }
  0xd5   :  { %v121_v27 = vadd.f32 %v120_v25, %v39_v24  ;;  %v217_v28 = vadd.f32 %v216_v26, %v39_v24  ;;  %v126_v54 = vmax.f32 %v119_v48, 0.0  ;;  %v222_v56 = vmax.f32 %v215_v49, 0.0 }
  0xd6   :  { %v122_v29 = vpop.f32.mrf.mxu0  ;;  %v218_v30 = vpop.f32.mrf.mxu1 }
  0xd7   :  { %v316_v31 = vmul.f32 -1.442695, %v121_v27  ;;  %v331_v32 = vmul.f32 -1.442695, %v217_v28  ;;  %v123_v33 = vadd.f32 %v122_v29, %v39_v24  ;;  %v219_v34 = vadd.f32 %v218_v30, %v39_v24 }
  0xd9   :  { %356 = vpow2.f32 %v316_v31  ;;  %v317_v35 = vmul.f32 -1.442695, %v123_v33  ;;  %v332_v36 = vmul.f32 -1.442695, %v219_v34 }
  0xda   :  { %358 = vpow2.f32 %v331_v32 }
  0xdb   :  { %360 = vpow2.f32 %v317_v35 }
  0xdc   :  { %362 = vpow2.f32 %v332_v36 }
  0xe6   :  { %v357_v37 = vpop.eup %356 }
  0xe7   :  { %v359_v38 = vpop.eup %358  ;;  %v133_v39 = vadd.f32 1.0, %v357_v37 }
  0xe8   :  { %v361_v40 = vpop.eup %360  ;;  %v229_v41 = vadd.f32 1.0, %v359_v38 }
  0xe9   :  { %v363_v42 = vpop.eup %362  ;;  %364 = vrcp.f32 %v133_v39  ;;  %v134_v43 = vadd.f32 1.0, %v361_v40 }
  0xea   :  { %366 = vrcp.f32 %v229_v41  ;;  %v230_v44 = vadd.f32 1.0, %v363_v42 }
  0xeb   :  { %368 = vrcp.f32 %v134_v43 }
  0xec   :  { %370 = vrcp.f32 %v230_v44 }
  0xf6   :  { %v365_v50 = vpop.eup %364 }
  0xf7   :  { %v367_v53 = vpop.eup %366  ;;  %v139_v57 = vmul.f32 %v365_v50, %v125_v51 }
  0xf8   :  { %v369_v55 = vpop.eup %368  ;;  %v235_v58 = vmul.f32 %v367_v53, %v221_v52 }
  0xf9   :  { %v371_v59 = vpop.eup %370  ;;  %v140_v60 = vmul.f32 %v369_v55, %v126_v54 }
  0xfa   :  { %v236_v61 = vmul.f32 %v371_v59, %v222_v56  ;;  %v237_v62 = vadd.f32 %v235_v58, %v139_v57 }
  0xfc   :  { %v238_v63 = vadd.f32 %v236_v61, %v140_v60 }
  0xfe   :  { %v239_v0 = vadd.f32 %v238_v63, %v237_v62 }
 0x100   :  { %240 = vadd.xlane.f32.xlu1 %v239_v0 }
 0x189   :  { %v241_v1 = vpop.xlane.xlu1 %240 }
 0x18a   :  { %v243_v2 = vmul.f32 0.001953125, %v241_v1 }
 0x18c   :  { %v252_v3 = vsub.f32 %v235_v58, %v243_v2  ;;  %v253_v4 = vsub.f32 %v236_v61, %v243_v2  ;;  %v244_v5 = vsub.f32 %v139_v57, %v243_v2  ;;  %v245_v6 = vsub.f32 %v140_v60, %v243_v2 }
 0x18e   :  { %v254_v7 = vmul.f32 %v252_v3, %v252_v3  ;;  %v255_v8 = vmul.f32 %v253_v4, %v253_v4  ;;  %v246_v9 = vmul.f32 %v244_v5, %v244_v5  ;;  %v247_v10 = vmul.f32 %v245_v6, %v245_v6 }
 0x190   :  { %v256_v11 = vadd.f32 %v255_v8, %v254_v7  ;;  %v248_v12 = vadd.f32 %v247_v10, %v246_v9 }
 0x192   :  { %257 = vadd.xlane.f32.xlu0 %v256_v11  ;;  %249 = vadd.xlane.f32.xlu1 %v248_v12 }
 0x21b   :  { %v258_v13 = vpop.xlane.xlu0 %257  ;;  %v250_v14 = vpop.xlane.xlu1 %249 }
 0x21c   :  { %v259_v15 = vadd.f32 %v258_v13, %v250_v14 }
 0x21e   :  { %v260_v16 = vmul.f32 0.001953125, %v259_v15 }
 0x220   :  { %v262_v17 = vadd.f32 1e-05, %v260_v16 }
 0x222   :  { %372 = vrsqrt.f32 %v262_v17 }
 0x22f   :  { %v373_v19 = vpop.eup %372 }
 0x230   :  { %v264_v20 = vmul.f32 %v373_v19, %v261_v18 }
 0x232   :  { %270 = vperm.xlu1 %338, %v264_v20   ;;  %v266_v22 = vmul.f32 %v264_v20, %v243_v2 }
 0x234   :  { %v267_v23 = vsub.f32 %v265_v21, %v266_v22 }
 0x236   :  { %277 = vperm.xlu1 %338, %v267_v23  }
 0x2ad   :  { %v271_v24 = vpop.permute.xlu1 %270 }
 0x2ae   :  { %v273_v25 = vmul.f32 %v271_v24, %v139_v57  ;;  %v274_v26 = vmul.f32 %v271_v24, %v140_v60  ;;  %v284_v27 = vmul.f32 %v271_v24, %v235_v58  ;;  %v285_v28 = vmul.f32 %v271_v24, %v236_v61 }
 0x2b1   :  { %v278_v29 = vpop.permute.xlu1 %277 }
 0x2b2   :  { %v280_v30 = vadd.f32 %v278_v29, %v273_v25  ;;  %v281_v31 = vadd.f32 %v278_v29, %v274_v26  ;;  %v286_v32 = vadd.f32 %v284_v27, %v278_v29  ;;  %v287_v33 = vadd.f32 %v285_v28, %v278_v29 }
 0x2b4   :  { %282 = vst [vmem:[#allocation2] sm:$0xff] %v280_v30  ;;  %283 = vst [vmem:[#allocation2 + $0x8] sm:$0xff] %v281_v31 }
 0x2b5   :  { %289 = vst [vmem:[#allocation2 + $0x10] sm:$0xff] %v286_v32  ;;  %290 = vst [vmem:[#allocation2 + $0x18] sm:$0xff] %v287_v33 }
 0x2b6   :  { %385 = shalt.err (!%p382_p4)
}
 0x2b7   :  { %s398_s4 = smov 256   ;;  %s399_s22 = smov 16  }
 0x2b8   :  { %302 = dma.vmem_to_hbm [thread:$0]  %s297_s21, 512, %s483_s5, [#allocation3], %s398_s4, %s398_s4, %s399_s22  }
 0x2b9   :  { %394 = dma.done.wait [#allocation3], 512  }
 0x2ba   :  { %395 = vsyncadd [#allocation3], 4294966784 }
 0x2bb   :  { %306 = vsyncpa [#allocation3], 1 }

</bundles_post_ra>
